<compile_context>
chip_gen: v6e
topology: v6e:2x2x1
jax: 0.10.0
libtpu: 0.0.40
codegen_flags: <defaults>
</compile_context>

<pallas_src>
import functools

import jax
import jax.numpy as jnp
from jax.experimental import pallas as pl
from jax.experimental.pallas import tpu as pltpu


def _round_up(x, m):
    return ((x + m - 1) // m) * m


def _fmix32(x):
    """murmur3 finalizer on int32 (logical right shifts emulated via masks)."""
    x = x ^ ((x >> 16) & 0xFFFF)
    x = x * jnp.int32(-2048144789)          # 0x85EBCA6B
    x = x ^ ((x >> 13) & 0x7FFFF)
    x = x * jnp.int32(-1028477387)          # 0xC2B2AE35
    x = x ^ ((x >> 16) & 0xFFFF)
    return x


def _pre_embed_kernel(seed_ref, ids_ref, table_ref, out_ref, *,
                      dropout_prob: float, training: bool):
    """One token block: one-hot MXU gather fused with dropout, single store.

    seed_ref : SMEM (1,)      int32   (scalar-prefetched)
    ids_ref  : VMEM (tb, 1)   int32
    table_ref: VMEM (V, D)    float32 (full table, same block every step)
    out_ref  : VMEM (tb, D)   float32
    """
    tb, d = out_ref.shape
    v = table_ref.shape[0]

    # --- gather via one-hot matmul on the MXU -------------------------------
    ids = ids_ref[...]                                            # (tb, 1)
    vocab_iota = jax.lax.broadcasted_iota(jnp.int32, (tb, v), 1)  # (tb, V)
    onehot = (ids == vocab_iota).astype(table_ref.dtype)          # (tb, V)
    gathered = jnp.dot(onehot, table_ref[...],
                       preferred_element_type=jnp.float32)        # (tb, D)

    # --- dropout fused before the store (train mode only) -------------------
    if training and dropout_prob > 0.0:
        blk = pl.program_id(0)
        row = jax.lax.broadcasted_iota(jnp.int32, (tb, d), 0)
        col = jax.lax.broadcasted_iota(jnp.int32, (tb, d), 1)
        base = (blk * tb + row) * d + col                 # global element index
        seed_v = seed_ref[0]
        x = base ^ (seed_v * jnp.int32(-1640531527))      # 0x9E3779B9
        x = _fmix32(x)                                    # ~uniform int32 bits

        # signed threshold: P(x >= thresh) == 1 - p for uniform int32 x
        thresh = int(round(dropout_prob * (2 ** 32))) - 2 ** 31
        thresh = max(min(thresh, 2 ** 31 - 1), -(2 ** 31))
        keep = x >= jnp.int32(thresh)

        scale = 1.0 / (1.0 - dropout_prob)
        gathered = jnp.where(keep, gathered * scale,
                             jnp.zeros_like(gathered))

    out_ref[...] = gathered.astype(out_ref.dtype)


def _pick_tb(n_tok, v, d):
    """Token block size: as large as possible, bounded by a VMEM work budget."""
    n8 = _round_up(max(n_tok, 1), 8)
    if n8 <= 1024:
        return n8
    # double-buffered output + one-hot + ids per token, keep ~8 MiB working set
    per_tok_bytes = 2 * d * 4 + v * 4 + 2 * 4
    tb = 1024
    while tb > 64 and tb * per_tok_bytes > (8 << 20):
        tb //= 2
    return tb


def pre_embeddings_forward(input_ids, table, *, dropout_prob=0.1,
                           training=False, seed=0, tb=None):
    """JAX wrapper mirroring PreEmbeddings.forward(input_ids)."""
    B, S = input_ids.shape
    V, D = table.shape
    n_tok = B * S

    if tb is None:
        tb = _pick_tb(n_tok, V, D)
    n_pad = _round_up(n_tok, tb)
    n_blocks = n_pad // tb

    ids_flat = input_ids.reshape(n_tok).astype(jnp.int32)
    if n_pad != n_tok:
        ids_flat = jnp.pad(ids_flat, (0, n_pad - n_tok))
    ids_col = ids_flat.reshape(n_pad, 1)
    seed_arr = jnp.array([seed], dtype=jnp.int32)

    kernel = functools.partial(_pre_embed_kernel,
                               dropout_prob=float(dropout_prob),
                               training=bool(training))

    itemsize = jnp.dtype(table.dtype).itemsize
    table_bytes = V * D * itemsize
    work_bytes = 2 * (tb * D * 4 + tb * V * 4 + tb * 4)   # double-buffered blocks
    needed = table_bytes + work_bytes + (4 << 20)
    vmem_limit = int(min(needed, 120 << 20)) if needed > (32 << 20) else None

    cost = pl.CostEstimate(
        flops=2 * n_pad * V * D,                 # one-hot matmul
        transcendentals=0,
        bytes_accessed=table_bytes + n_pad * D * itemsize + n_pad * 4,
    )

    out_flat = pl.pallas_call(
        kernel,
        out_shape=jax.ShapeDtypeStruct((n_pad, D), table.dtype),
        grid_spec=pltpu.PrefetchScalarGridSpec(
            num_scalar_prefetch=1,               # seed -> SMEM
            grid=(n_blocks,),
            in_specs=[
                # per-block token ids, (tb, 1) so ids live on sublanes
                pl.BlockSpec((tb, 1), lambda b, seed: (b, 0)),
                # full embedding table resident in VMEM (constant block index)
                pl.BlockSpec((V, D), lambda b, seed: (0, 0)),
            ],
            out_specs=pl.BlockSpec((tb, D), lambda b, seed: (b, 0)),
        ),
        compiler_params=pltpu.CompilerParams(
            dimension_semantics=("parallel",),
            vmem_limit_bytes=vmem_limit,
        ),
        cost_estimate=cost,
    )(seed_arr, ids_col, table)

    return out_flat[:n_tok].reshape(B, S, D)


if __name__ == "__main__":
    key = jax.random.PRNGKey(0)
    k_tbl, k_ids = jax.random.split(key)

    # Shapes implied by the module: pretrained_embeddings is (vocab, dim).
    V, D = 64, 128          # small vocab, lane-aligned embedding dim
    B, S = 2, 8             # batch=2, seq=8  -> 16 tokens
    dropout_prob = 0.1      # config['embed_dropout_prob']

    table = jax.random.normal(k_tbl, (V, D), dtype=jnp.float32)
    input_ids = jax.random.randint(k_ids, (B, S), 0, V, dtype=jnp.int32)

    # Eval-mode forward (dropout is identity) -> deterministic, check vs reference.
    out = pre_embeddings_forward(input_ids, table,
                                 dropout_prob=dropout_prob, training=False)
    out = jax.block_until_ready(out)

    ref = jnp.take(table, input_ids, axis=0)
    assert out.shape == (B, S, D)
    assert jnp.allclose(out, ref, atol=1e-5, rtol=1e-5), "embedding gather mismatch"

    # Train-mode forward exercises the fused in-kernel dropout path.
    out_train = pre_embeddings_forward(input_ids, table,
                                       dropout_prob=dropout_prob,
                                       training=True, seed=123)
    out_train = jax.block_until_ready(out_train)
    assert out_train.shape == (B, S, D)
    # every kept element must equal ref * 1/(1-p); dropped elements are 0
    scale = 1.0 / (1.0 - dropout_prob)
    kept = out_train != 0
    assert jnp.allclose(jnp.where(kept, out_train, 0.0),
                        jnp.where(kept, ref * scale, 0.0),
                        atol=1e-4, rtol=1e-4), "dropout scaling mismatch"

    print("KERNEL_OK")
</pallas_src>

<mosaic_0001>
module attributes {stable_mosaic.version = 11 : i64} {
  func.func @_pre_embed_kernel(%arg0: i32, %arg1: memref<1xi32, #tpu.memory_space<smem>>, %arg2: memref<16x1xi32, #tpu.memory_space<vmem>>, %arg3: memref<64x128xf32, #tpu.memory_space<vmem>>, %arg4: memref<16x128xf32, #tpu.memory_space<vmem>>) attributes {dimension_semantics = [#tpu.dimension_semantics<parallel>], iteration_bounds = array<i64: 1>, scalar_prefetch = 1 : i64, scratch_operands = 0 : i64, tpu.core_type = #tpu.core_type<tc>, window_params = [{transform_indices = @transform_0, window_bounds = array<i64: 16, 1>}, {pipeline_mode = #tpu.pipeline_mode<synchronous>, transform_indices = @transform_1, window_bounds = array<i64: 64, 128>}, {transform_indices = @transform_2, window_bounds = array<i64: 16, 128>}]} {
    %c0 = arith.constant 0 : index
    %c0_0 = arith.constant 0 : index
    %0 = vector.load %arg2[%c0, %c0_0] : memref<16x1xi32, #tpu.memory_space<vmem>>, vector<16x1xi32>
    %1 = tpu.iota {dimensions = array<i32: 1>} : vector<16x64xi32>
    %2 = vector.broadcast %0 : vector<16x1xi32> to vector<16x64xi32>
    %3 = arith.cmpi eq, %2, %1 : vector<16x64xi32>
    %4 = arith.extui %3 : vector<16x64xi1> to vector<16x64xi32>
    %5 = arith.sitofp %4 : vector<16x64xi32> to vector<16x64xf32>
    %c0_1 = arith.constant 0 : index
    %c0_2 = arith.constant 0 : index
    %6 = vector.load %arg3[%c0_1, %c0_2] : memref<64x128xf32, #tpu.memory_space<vmem>>, vector<64x128xf32>
    %cst = arith.constant dense<0.000000e+00> : vector<16x128xf32>
    %7 = tpu.matmul %5, %6, %cst {dimension_numbers = #tpu.dot_dimension_numbers<[1], [0], [0], [1], [0, 0, 1, 1], [], []>} : vector<16x64xf32>, vector<64x128xf32>, vector<16x128xf32> -> vector<16x128xf32>
    %c0_3 = arith.constant 0 : index
    %c0_4 = arith.constant 0 : index
    %8 = vector.load %arg4[%c0_3, %c0_4] : memref<16x128xf32, #tpu.memory_space<vmem>>, vector<16x128xf32>
    tpu.vector_store %arg4[%c0_3, %c0_4], %7 {strides = array<i32>} : memref<16x128xf32, #tpu.memory_space<vmem>>, vector<16x128xf32>,
    return
  }
  func.func @transform_0(%arg0: i32, %arg1: memref<1xi32, #tpu.memory_space<smem>>) -> (i32, i32) {
    %c0_i32 = arith.constant 0 : i32
    %c0_i32_0 = arith.constant 0 : i32
    return %arg0, %c0_i32 : i32, i32
  }
  func.func @transform_1(%arg0: i32, %arg1: memref<1xi32, #tpu.memory_space<smem>>) -> (i32, i32) {
    %c0_i32 = arith.constant 0 : i32
    %c0_i32_0 = arith.constant 0 : i32
    %c0_i32_1 = arith.constant 0 : i32
    return %c0_i32, %c0_i32_0 : i32, i32
  }
  func.func @transform_2(%arg0: i32, %arg1: memref<1xi32, #tpu.memory_space<smem>>) -> (i32, i32) {
    %c0_i32 = arith.constant 0 : i32
    %c0_i32_0 = arith.constant 0 : i32
    return %arg0, %c0_i32 : i32, i32
  }
}

</mosaic_0001>

<bundles_post_ra>
// kernel: tpu_custom_call.1
= control target key start
LH: loop header
LB: loop body
LE: loop exit
PB: predicated region body
PF: predicated region fallthrough
CT: control target
= control target key end

     0   :  { %9 = vsyncpa [#allocation5], 0  ;;  %s281_s0 = inlined_call_operand.<no memory space> [shape: s32[1], index: 0, kind: input, shape index: {}]   ;;  %s282_s1 = inlined_call_operand.vmem [shape: s32[16,1], index: 1, kind: input, shape index: {}]   ;;  %s283_s2 = inlined_call_operand.hbm [shape: f32[64,128], index: 2, kind: input, shape index: {}]   ;;  %s284_s3 = inlined_call_operand.hbm [shape: f32[16,128], index: 3, kind: output, shape index: {}]  }
   0x1   :  { %10 = vsyncpa [#allocation6], 0  ;;  %s237_s12 = smov [#allocation4]  }
   0x2   :  { %s18_s13 = sshll.u32 %s237_s12, 4  ;;  %s19_s13 = int_to_ptr.vmem [resolvable:$true] %s18_s13 }
   0x3   :  { %s201_s14 = scalar_lea.vmem %s19_s13, 1024  ;;  %p206_p1 = scmp.lt.s32.totalorder %s19_s13, %s19_s13 }
   0x4   :  { %p202_p0 = scmp.ne.s32.totalorder %s19_s13, %s201_s14  ;;  %p207_p2 = scmp.lt.s32.totalorder %s201_s14, %s201_s14 }
   0x6   :  { %p208_p3 = por %p207_p2, %p206_p1 }
   0x8   :  { %p209_p4 = pnand %p208_p3, %p202_p0 }
   0xa   :  { %212 = shalt.err (!%p209_p4)
}
   0xb   :  { %s238_s0 = smov 128   ;;  %s239_s15 = smov 8  }
   0xc   :  { %24 = dma.hbm_to_vmem [thread:$0]  %s283_s2, 1024, %s19_s13, [#allocation5], %s238_s0, %s238_s0, %s239_s15  }
   0xd   :  { %233 = dma.done.wait [#allocation5], 1024  }
   0xe   :  { %234 = vsyncadd [#allocation5], 4294966272  ;;  %v240_v0 = vmov 0   ;;  %v28_v1 = vld [vmem:[%s282_s1] sm:$0xff]  ;;  %v51_v2 = vld [vmem:[#allocation4 + $0x38] sm:$0xff]  ;;  %v30_v11 = vlaneseq  ;;  %vm52_vm0 = vcmask 523264  }
   0xf   :  { %192 = vset.pattern.permute.xlu0 %v240_v0  ;;  %167 = vmatprep.subr.mxu0 %v51_v2  ;;  %v50_v3 = vld [vmem:[#allocation4 + $0x30] sm:$0xff]  ;;  %v29_v4 = vld [vmem:[%s282_s1 + $0x8] sm:$0xff]  ;;  %v48_v6 = vld [vmem:[#allocation4 + $0x20] sm:$0xff]  ;;  %v241_v14 = vmov 0.0   ;;  %s242_s1 = smov [#allocation7]  }
  0x10   :  { %33 = vperm.xlu0 %192, %v28_v1   ;;  %168 = vmatpush3.msra.mxu0 %v51_v2  ;;  %v49_v5 = vld [vmem:[#allocation4 + $0x28] sm:$0xff]  ;;  %v47_v7 = vld [vmem:[#allocation4 + $0x18] sm:$0xff]  ;;  %v46_v8 = vld [vmem:[#allocation4 + $0x10] sm:$0xff]  ;;  %v31_v12 = vand.u32 127, %v30_v11  ;;  %s141_s2 = sshll.u32 %s242_s1, 4  ;;  %s142_s2 = int_to_ptr.vmem [resolvable:$true] %s141_s2 }
  0x11   :  { %169 = vmatprep.subr.mxu0 %v50_v3  ;;  %v45_v9 = vld [vmem:[#allocation4 + $0x8] sm:$0xff]  ;;  %v44_v10 = vld [vmem:[#allocation4] sm:$0xff]  ;;  %s213_s22 = scalar_lea.vmem %s142_s2, 256  ;;  %p218_p6 = scmp.lt.s32.totalorder %s142_s2, %s142_s2 }
  0x12   :  { %170 = vmatpush3.msra.mxu0 %v50_v3  ;;  %p214_p5 = scmp.ne.s32.totalorder %s142_s2, %s213_s22  ;;  %p219_p7 = scmp.lt.s32.totalorder %s213_s22, %s213_s22 }
  0x13   :  { %171 = vmatprep.subr.mxu0 %v49_v5 }
  0x14   :  { %36 = vperm.xlu0 %192, %v29_v4   ;;  %172 = vmatpush3.msra.mxu0 %v49_v5  ;;  %p220_p8 = por %p219_p7, %p218_p6 }
  0x15   :  { %173 = vmatprep.subr.mxu0 %v48_v6 }
  0x16   :  { %174 = vmatpush3.msra.mxu0 %v48_v6  ;;  %p221_p9 = pnand %p220_p8, %p214_p5 }
  0x17   :  { %175 = vmatprep.subr.mxu0 %v47_v7 }
  0x18   :  { %176 = vmatpush3.msra.mxu0 %v47_v7 }
  0x19   :  { %177 = vmatprep.subr.mxu0 %v46_v8 }
  0x1a   :  { %178 = vmatpush3.msra.mxu0 %v46_v8 }
  0x1b   :  { %179 = vmatprep.subr.mxu0 %v45_v9 }
  0x1c   :  { %180 = vmatpush3.msra.mxu0 %v45_v9 }
  0x1d   :  { %181 = vmatprep.subr.mxu0 %v44_v10 }
  0x1e   :  { %182 = vmatpush3.msra.mxu0 %v44_v10 }
  0x8b   :  { %v34_v13 = vpop.permute.xlu0 %33 }
  0x8c   :  { %vm38_vm1 = vcmp.eq.s32.totalorder %v34_v13, %v31_v12 }
  0x8d   :  { %v153_v15 = vsel %vm38_vm1, 1.0, %v241_v14 }
  0x8e   :  { %183 = vmatprep.mubr.msk.f32.mxu0 %vm52_vm0, %v153_v15 }
  0x8f   :  { %v37_v16 = vpop.permute.xlu0 %36 }
  0x90   :  { %vm39_vm2 = vcmp.eq.s32.totalorder %v37_v16, %v31_v12 }
  0x91   :  { %v154_v17 = vsel %vm39_vm2, 1.0, %v241_v14 }
  0x92   :  { %184 = vmatmul.mubr.msk.f32.vlgmr.msra.gmra.mxu0 %vm52_vm0, %v154_v17 }
 0x152   :  { %v185_v18 = vpop.f32.mrf.mxu0 }
 0x153   :  { %135 = vst [vmem:[#allocation7 + $0x8] sm:$0xff] %v185_v18 }
 0x154   :  { %v125_v19 = vpop.f32.mrf.mxu0 }
 0x155   :  { %134 = vst [vmem:[#allocation7] sm:$0xff] %v125_v19 }
 0x156   :  { %224 = shalt.err (!%p221_p9)
}
 0x157   :  { %147 = dma.vmem_to_hbm [thread:$0]  %s142_s2, 256, %s284_s3, [#allocation6], %s238_s0, %s238_s0, %s239_s15  }
 0x158   :  { %235 = dma.done.wait [#allocation6], 256  }
 0x159   :  { %236 = vsyncadd [#allocation6], 4294967040 }
 0x15a   :  { %151 = vsyncpa [#allocation5], 1 }
 0x15b   :  { %152 = vsyncpa [#allocation6], 1 }

</bundles_post_ra>
